<compile_context>
chip_gen: v7x
topology: tpu7x:2x2x1
jax: 0.10.0
libtpu: 0.0.40
codegen_flags: <defaults>
</compile_context>

<pallas_src>
import functools

import jax
import jax.numpy as jnp
from jax.experimental import pallas as pl
from jax.experimental.pallas import tpu as pltpu

_MIB = 1 << 20
_CHUNK_TEMP_TARGET = 1 * _MIB   # target f32 bytes for one pooling-chunk temp
_MAX_POOL_CHUNKS = 64           # bound on the static unroll of the pool loop
_MAX_BATCH_BLOCK = 16           # cap on batch packing (compile-time unroll of SE)


def _vmem_capacity_bytes():
    """Physical per-core VMEM; conservative 64 MiB (v7x) if the query fails."""
    try:
        cap = int(pltpu.get_tpu_info().vmem_capacity_bytes)
        if cap > 0:
            return cap
    except Exception:
        pass
    return 64 * _MIB


def _pool_chunk(tb, nf, hw):
    """Lane count of one pooling chunk: keeps a (tb, nf, chunk) f32 temp ~<=1 MiB."""
    per_lane = tb * nf * 4
    target = max(128, (_CHUNK_TEMP_TARGET // per_lane) // 128 * 128)
    chunk = min(hw, target)
    if chunk < hw and pl.cdiv(hw, chunk) > _MAX_POOL_CHUNKS:
        chunk = min(hw, pl.cdiv(pl.cdiv(hw, _MAX_POOL_CHUNKS), 128) * 128)
    return max(1, chunk)


def _largest_divisor_leq(n, cap):
    """Largest divisor of n that is <= cap (avoids ragged batch blocks)."""
    cap = max(1, min(n, cap))
    for d in range(cap, 0, -1):
        if n % d == 0:
            return d
    return 1


# --------------------------------------------------------------------------- #
# Fused single-pass kernel: pool + squeeze-excite + apply, grid over batch
# blocks of TB elements.
# --------------------------------------------------------------------------- #
def _caf_fused_kernel(fft_ref, mul_ref, w1_ref, w2_ref, out_ref, *,
                      nf, inv_hw, chunk):
    # Blocks: fft/mul/out -> (TB, nf, HW); w1 -> (nf//4, 2nf); w2 -> (2nf, nf//4)
    tb = fft_ref.shape[0]
    hw = fft_ref.shape[2]

    # Global average pool, chunked over HW so the f32 convert/accumulate
    # temporary is chunk-sized — never a full f32 copy of a sub-32-bit map.
    p_f = jnp.zeros((tb, nf, 1), jnp.float32)
    p_m = jnp.zeros((tb, nf, 1), jnp.float32)
    for start in range(0, hw, chunk):
        size = min(chunk, hw - start)
        p_f = p_f + jnp.sum(fft_ref[:, :, pl.ds(start, size)],
                            axis=2, keepdims=True, dtype=jnp.float32)
        p_m = p_m + jnp.sum(mul_ref[:, :, pl.ds(start, size)],
                            axis=2, keepdims=True, dtype=jnp.float32)
    pooled = jnp.concatenate([p_f, p_m], axis=1) * inv_hw       # (TB, 2nf, 1) f32

    # Squeeze-excite: 1x1 convs on (C,1,1) tensors == channel matvecs.
    # Batched over TB via broadcast weight + batched einsum (tiny; fully hidden
    # behind the multi-MiB block DMA).  Channels stay on sublanes throughout.
    w1b = jnp.broadcast_to(w1_ref[...], (tb,) + tuple(w1_ref.shape))  # (TB, nf//4, 2nf)
    y1 = jnp.maximum(
        jnp.einsum('bhc,bcx->bhx', w1b, pooled,
                   preferred_element_type=jnp.float32), 0.0)          # (TB, nf//4, 1)
    w2b = jnp.broadcast_to(w2_ref[...], (tb,) + tuple(w2_ref.shape))  # (TB, 2nf, nf//4)
    attn = jax.nn.sigmoid(
        jnp.einsum('bch,bhx->bcx', w2b, y1,
                   preferred_element_type=jnp.float32))               # (TB, 2nf, 1)
    attn = attn.astype(out_ref.dtype)     # scale/add runs in the input dtype

    fw = attn[:, :nf, :]                  # (TB, nf, 1), broadcasts over HW
    mw = attn[:, nf:, :]
    out_ref[...] = fw * fft_ref[...] + mw * mul_ref[...]


# --------------------------------------------------------------------------- #
# Two-pass fallback: elementwise apply kernel, grid over (batch, spatial tile).
# --------------------------------------------------------------------------- #
def _caf_apply_kernel(fft_ref, mul_ref, fw_ref, mw_ref, out_ref):
    # Blocks: fft/mul/out -> (1, nf, T); fw/mw -> (1, nf, 1)
    out_ref[0] = fw_ref[0] * fft_ref[0] + mw_ref[0] * mul_ref[0]


# --------------------------------------------------------------------------- #
# Wrapper
# --------------------------------------------------------------------------- #
def channel_attention_fusion(fft_features, multi_features, w1, w2, *,
                             force_two_pass=False, spatial_block=None):
    """Pallas TPU implementation of ChannelAttentionFusion.forward.

    fft_features, multi_features: (B, nf, H, W), NCHW (same as PyTorch).
    w1: (nf//4, 2*nf) -- squeezed weight of Conv2d(2*nf, nf//4, 1, bias=False)
    w2: (2*nf, nf//4) -- squeezed weight of Conv2d(nf//4, 2*nf, 1, bias=False)
    """
    B, nf, H, W = fft_features.shape
    HW = H * W
    hidden = w1.shape[0]
    dtype = fft_features.dtype
    itemsize = jnp.dtype(dtype).itemsize

    fft3 = fft_features.reshape(B, nf, HW)
    mul3 = multi_features.reshape(B, nf, HW)

    vmem_cap = _vmem_capacity_bytes()
    likely_multicore = vmem_cap <= 64 * _MIB        # v7x-class: 2 TCs, 64 MiB/TC

    block1 = nf * HW * itemsize                     # one map, one batch element
    weight_bytes = 2 * 2 * (hidden * 2 * nf) * 4    # both weights, dbl-buffered, f32
    headroom = 6 * _MIB                             # pool-chunk temps + slack
    stream_bytes = 3 * B * nf * HW * itemsize       # true HBM traffic (fused)

    # Fused-path feasibility at TB=1: double-buffered in/in/out = 6 blocks.
    fused_fits = 6 * block1 + weight_bytes + headroom <= int(0.8 * vmem_cap)
    # v7x (2 TCs): with B == 1 the fused grid=(1,) pins everything on one core
    # with zero cross-step overlap; the tiled two-pass kernel fills both cores.
    prefer_split = likely_multicore and B == 1 and block1 >= 8 * _MIB
    use_fused = (not force_two_pass) and fused_fits and not prefer_split

    if use_fused:
        # Pack TB batch elements per grid step so per-step DMAs are multi-MiB.
        per_map_target = min(12 * _MIB, vmem_cap // 10)
        tb_budget = max(
            1, (int(0.8 * vmem_cap) - weight_bytes - headroom) // (6 * block1))
        tb_cap = min(B, tb_budget, max(1, per_map_target // block1),
                     _MAX_BATCH_BLOCK)
        if likely_multicore and B >= 2:
            tb_cap = min(tb_cap, pl.cdiv(B, 2))     # keep >=2 steps for 2 TCs
        TB = _largest_divisor_leq(B, max(1, tb_cap))
        chunk = _pool_chunk(TB, nf, HW)

        fused_need = (6 * TB * block1 + weight_bytes
                      + 4 * TB * nf * chunk * 4 + 2 * _MIB)
        vmem_limit = min(max(int(fused_need * 1.2), 32 * _MIB),
                         int(0.92 * vmem_cap))

        w1f = jnp.asarray(w1, jnp.float32)          # (nf//4, 2nf)
        w2f = jnp.asarray(w2, jnp.float32)          # (2nf, nf//4)

        kernel = functools.partial(_caf_fused_kernel, nf=nf, inv_hw=1.0 / HW,
                                   chunk=chunk)
        out = pl.pallas_call(
            kernel,
            out_shape=jax.ShapeDtypeStruct((B, nf, HW), dtype),
            grid_spec=pltpu.PrefetchScalarGridSpec(
                num_scalar_prefetch=0,
                grid=(B // TB,),
                in_specs=[
                    pl.BlockSpec((TB, nf, HW), lambda b: (b, 0, 0)),
                    pl.BlockSpec((TB, nf, HW), lambda b: (b, 0, 0)),
                    pl.BlockSpec((hidden, 2 * nf), lambda b: (0, 0)),
                    pl.BlockSpec((2 * nf, hidden), lambda b: (0, 0)),
                ],
                out_specs=pl.BlockSpec((TB, nf, HW), lambda b: (b, 0, 0)),
            ),
            compiler_params=pltpu.CompilerParams(
                dimension_semantics=("parallel",),
                vmem_limit_bytes=vmem_limit,
            ),
            cost_estimate=pl.CostEstimate(
                flops=int(2 * B * 2 * nf * HW        # pool accumulation
                          + 3 * B * nf * HW          # weighted fusion
                          + 4 * B * 2 * nf * hidden),
                transcendentals=int(2 * B * nf),
                bytes_accessed=int(stream_bytes + weight_bytes),
            ),
        )(fft3, mul3, w1f, w2f)
        return out.reshape(B, nf, H, W)

    # ---------------- two-pass fallback (large H*W / small VMEM) -------------
    # Pass 1 (XLA, lane-dense row vectors): global average pool + squeeze-excite.
    pooled = jnp.concatenate(
        [jnp.mean(fft3, axis=2, dtype=jnp.float32),
         jnp.mean(mul3, axis=2, dtype=jnp.float32)], axis=1)          # (B, 2nf)
    y1 = jnp.maximum(pooled @ jnp.asarray(w1, jnp.float32).T, 0.0)    # (B, nf//4)
    attn = jax.nn.sigmoid(y1 @ jnp.asarray(w2, jnp.float32).T)        # (B, 2nf)
    attn = attn.astype(dtype)
    fw = attn[:, :nf].reshape(B, nf, 1)
    mw = attn[:, nf:].reshape(B, nf, 1)

    # Pass 2 (Pallas): elementwise apply, tiled over (batch, spatial).
    # Raised tile budget: ~40 MiB of blocks on 128 MiB parts, ~20 MiB on v7x.
    t_budget = min(int(0.32 * vmem_cap), 40 * _MIB)
    if spatial_block is not None:
        t = int(spatial_block)
    else:
        t = max(256, (t_budget // (6 * nf * itemsize)) // 128 * 128)  # lanes, %128
    hw128 = pl.cdiv(HW, 128) * 128
    t = min(t, hw128)
    if t >= HW:                       # single full-extent block along HW
        t = HW
    n_t = pl.cdiv(HW, t)

    apply_need = 6 * nf * t * itemsize + 1 * _MIB
    vmem_limit = min(max(int(apply_need * 1.3), 24 * _MIB), int(0.92 * vmem_cap))

    out = pl.pallas_call(
        _caf_apply_kernel,
        out_shape=jax.ShapeDtypeStruct((B, nf, HW), dtype),
        grid_spec=pltpu.PrefetchScalarGridSpec(
            num_scalar_prefetch=0,
            grid=(B, n_t),
            in_specs=[
                pl.BlockSpec((1, nf, t), lambda b, s: (b, 0, s)),
                pl.BlockSpec((1, nf, t), lambda b, s: (b, 0, s)),
                pl.BlockSpec((1, nf, 1), lambda b, s: (b, 0, 0)),
                pl.BlockSpec((1, nf, 1), lambda b, s: (b, 0, 0)),
            ],
            out_specs=pl.BlockSpec((1, nf, t), lambda b, s: (b, 0, s)),
        ),
        compiler_params=pltpu.CompilerParams(
            dimension_semantics=("parallel", "parallel"),
            vmem_limit_bytes=vmem_limit,
        ),
        cost_estimate=pl.CostEstimate(
            flops=int(3 * B * nf * HW),
            transcendentals=0,
            bytes_accessed=int(stream_bytes),
        ),
    )(fft3, mul3, fw, mw)
    return out.reshape(B, nf, H, W)


# --------------------------------------------------------------------------- #
# Pure-JAX reference matching the PyTorch forward.
# --------------------------------------------------------------------------- #
def _reference(fft, mul, w1, w2):
    x = jnp.concatenate([fft, mul], axis=1)               # (B, 2nf, H, W)
    pooled = jnp.mean(x, axis=(2, 3))                     # (B, 2nf)
    y1 = jnp.maximum(pooled @ w1.T, 0.0)                  # (B, nf//4)
    attn = jax.nn.sigmoid(y1 @ w2.T)                      # (B, 2nf)
    nf = fft.shape[1]
    fw = attn[:, :nf, None, None]
    mw = attn[:, nf:, None, None]
    return fw * fft + mw * mul


if __name__ == "__main__":
    key = jax.random.PRNGKey(0)
    k1, k2, k3, k4 = jax.random.split(key, 4)

    # --- base case: B=2, nf=4, 16x16, f32 (fused path, batch-packed) ---------
    B, nf, H, W = 2, 4, 16, 16
    fft_features = jax.random.normal(k1, (B, nf, H, W), dtype=jnp.float32)
    multi_features = jax.random.normal(k2, (B, nf, H, W), dtype=jnp.float32)
    # PyTorch conv weights are (out, in, 1, 1); squeezed here to (out, in).
    w1 = 0.1 * jax.random.normal(k3, (nf // 4, 2 * nf), dtype=jnp.float32)
    w2 = 0.1 * jax.random.normal(k4, (2 * nf, nf // 4), dtype=jnp.float32)

    ref = _reference(fft_features, multi_features, w1, w2)

    out = jax.block_until_ready(
        channel_attention_fusion(fft_features, multi_features, w1, w2))
    assert out.shape == (B, nf, H, W)
    assert jnp.allclose(out, ref, atol=1e-5, rtol=1e-5), "fused kernel mismatch"

    out2 = jax.block_until_ready(
        channel_attention_fusion(fft_features, multi_features, w1, w2,
                                 force_two_pass=True))
    assert jnp.allclose(out2, ref, atol=1e-5, rtol=1e-5), "apply kernel mismatch"

    # --- bf16 fused path (attention weights applied in the input dtype) ------
    fft_bf16 = fft_features.astype(jnp.bfloat16)
    mul_bf16 = multi_features.astype(jnp.bfloat16)
    ref_bf16 = _reference(fft_bf16.astype(jnp.float32),
                          mul_bf16.astype(jnp.float32), w1, w2)
    out_bf16 = jax.block_until_ready(
        channel_attention_fusion(fft_bf16, mul_bf16, w1, w2))
    assert jnp.allclose(out_bf16.astype(jnp.float32), ref_bf16,
                        atol=1e-1, rtol=1e-1), "bf16 fused kernel mismatch"

    # --- ragged spatial tile on the two-pass path (HW % tile != 0) -----------
    B2, nf2, H2, W2 = 2, 8, 16, 20
    kk = jax.random.split(jax.random.PRNGKey(1), 4)
    f2 = jax.random.normal(kk[0], (B2, nf2, H2, W2), dtype=jnp.float32)
    m2 = jax.random.normal(kk[1], (B2, nf2, H2, W2), dtype=jnp.float32)
    w1b = 0.1 * jax.random.normal(kk[2], (nf2 // 4, 2 * nf2), dtype=jnp.float32)
    w2b = 0.1 * jax.random.normal(kk[3], (2 * nf2, nf2 // 4), dtype=jnp.float32)
    ref2 = _reference(f2, m2, w1b, w2b)
    out3 = jax.block_until_ready(
        channel_attention_fusion(f2, m2, w1b, w2b,
                                 force_two_pass=True, spatial_block=256))
    assert jnp.allclose(out3, ref2, atol=1e-5, rtol=1e-5), "ragged apply mismatch"

    # --- odd batch on the fused path (divisor-based batch packing) -----------
    f3 = jax.random.normal(kk[0], (3, nf2, 16, 16), dtype=jnp.float32)
    m3 = jax.random.normal(kk[1], (3, nf2, 16, 16), dtype=jnp.float32)
    ref3 = _reference(f3, m3, w1b, w2b)
    out4 = jax.block_until_ready(channel_attention_fusion(f3, m3, w1b, w2b))
    assert jnp.allclose(out4, ref3, atol=1e-5, rtol=1e-5), "odd-batch fused mismatch"

    # --- B=4 fused path (guarantees TB >= 2 on every TPU generation) ---------
    f4 = jax.random.normal(kk[2], (4, nf2, 16, 16), dtype=jnp.float32)
    m4 = jax.random.normal(kk[3], (4, nf2, 16, 16), dtype=jnp.float32)
    ref4 = _reference(f4, m4, w1b, w2b)
    out5 = jax.block_until_ready(channel_attention_fusion(f4, m4, w1b, w2b))
    assert jnp.allclose(out5, ref4, atol=1e-5, rtol=1e-5), "packed fused mismatch"

    print("KERNEL_OK")
</pallas_src>

<mosaic_0001>
module attributes {stable_mosaic.version = 11 : i64} {
  func.func @_caf_fused_kernel(%arg0: i32, %arg1: memref<1x4x256xf32, #tpu.memory_space<vmem>>, %arg2: memref<1x4x256xf32, #tpu.memory_space<vmem>>, %arg3: memref<1x8xf32, #tpu.memory_space<vmem>>, %arg4: memref<8x1xf32, #tpu.memory_space<vmem>>, %arg5: memref<1x4x256xf32, #tpu.memory_space<vmem>>) attributes {dimension_semantics = [#tpu.dimension_semantics<parallel>], iteration_bounds = array<i64: 2>, scalar_prefetch = 0 : i64, scratch_operands = 0 : i64, tpu.core_type = #tpu.core_type<tc>, window_params = [{transform_indices = @transform_0, window_bounds = array<i64: 1, 4, 256>}, {transform_indices = @transform_1, window_bounds = array<i64: 1, 4, 256>}, {pipeline_mode = #tpu.pipeline_mode<synchronous>, transform_indices = @transform_2, window_bounds = array<i64: 1, 8>}, {pipeline_mode = #tpu.pipeline_mode<synchronous>, transform_indices = @transform_3, window_bounds = array<i64: 8, 1>}, {transform_indices = @transform_4, window_bounds = array<i64: 1, 4, 256>}]} {
    %cst = arith.constant 0.000000e+00 : f32
    %0 = vector.broadcast %cst : f32 to vector<1x4x1xf32>
    %cst_0 = arith.constant 0.000000e+00 : f32
    %1 = vector.broadcast %cst_0 : f32 to vector<1x4x1xf32>
    %c0 = arith.constant 0 : index
    %c0_1 = arith.constant 0 : index
    %c0_2 = arith.constant 0 : index
    %2 = vector.load %arg1[%c0, %c0_1, %c0_2] : memref<1x4x256xf32, #tpu.memory_space<vmem>>, vector<1x4x256xf32>
    %cst_3 = arith.constant dense<0.000000e+00> : vector<1x4xf32>
    %3 = vector.multi_reduction <add>, %2, %cst_3 [2] : vector<1x4x256xf32> to vector<1x4xf32>
    %4 = vector.shape_cast %3 : vector<1x4xf32> to vector<1x4x1xf32>
    %5 = arith.addf %0, %4 : vector<1x4x1xf32>
    %c0_4 = arith.constant 0 : index
    %c0_5 = arith.constant 0 : index
    %c0_6 = arith.constant 0 : index
    %6 = vector.load %arg2[%c0_4, %c0_5, %c0_6] : memref<1x4x256xf32, #tpu.memory_space<vmem>>, vector<1x4x256xf32>
    %cst_7 = arith.constant dense<0.000000e+00> : vector<1x4xf32>
    %7 = vector.multi_reduction <add>, %6, %cst_7 [2] : vector<1x4x256xf32> to vector<1x4xf32>
    %8 = vector.shape_cast %7 : vector<1x4xf32> to vector<1x4x1xf32>
    %9 = arith.addf %1, %8 : vector<1x4x1xf32>
    %10 = tpu.concatenate %5, %9 in 1 : vector<1x4x1xf32>, vector<1x4x1xf32> -> vector<1x8x1xf32>
    %cst_8 = arith.constant 3.906250e-03 : f32
    %11 = vector.broadcast %cst_8 : f32 to vector<1x8x1xf32>
    %12 = arith.mulf %10, %11 : vector<1x8x1xf32>
    %c0_9 = arith.constant 0 : index
    %c0_10 = arith.constant 0 : index
    %13 = vector.load %arg3[%c0_9, %c0_10] : memref<1x8xf32, #tpu.memory_space<vmem>>, vector<1x8xf32>
    %14 = vector.shape_cast %13 : vector<1x8xf32> to vector<1x1x8xf32>
    "tpu.trace_start"() <{level = 10 : i32, message = "bhc,bcx->bhx"}> : () -> ()
    %cst_11 = arith.constant dense<0.000000e+00> : vector<1x1x1xf32>
    %15 = tpu.matmul %14, %12, %cst_11 {dimension_numbers = #tpu.dot_dimension_numbers<[2], [1], [1], [2], [0, 0, 0, 1, 1, 2], [0], [0]>} : vector<1x1x8xf32>, vector<1x8x1xf32>, vector<1x1x1xf32> -> vector<1x1x1xf32>
    "tpu.trace_stop"() : () -> ()
    %cst_12 = arith.constant 0.000000e+00 : f32
    %16 = vector.broadcast %cst_12 : f32 to vector<1x1x1xf32>
    %17 = arith.maximumf %15, %16 : vector<1x1x1xf32>
    %c0_13 = arith.constant 0 : index
    %c0_14 = arith.constant 0 : index
    %18 = vector.load %arg4[%c0_13, %c0_14] : memref<8x1xf32, #tpu.memory_space<vmem>>, vector<8x1xf32>
    %19 = vector.shape_cast %18 : vector<8x1xf32> to vector<1x8x1xf32>
    "tpu.trace_start"() <{level = 10 : i32, message = "bch,bhx->bcx"}> : () -> ()
    %cst_15 = arith.constant dense<0.000000e+00> : vector<1x8x1xf32>
    %20 = tpu.matmul %19, %17, %cst_15 {dimension_numbers = #tpu.dot_dimension_numbers<[2], [1], [1], [2], [0, 0, 0, 1, 1, 2], [0], [0]>} : vector<1x8x1xf32>, vector<1x1x1xf32>, vector<1x8x1xf32> -> vector<1x8x1xf32>
    "tpu.trace_stop"() : () -> ()
    %21 = arith.negf %20 : vector<1x8x1xf32>
    %22 = math.exp %21 : vector<1x8x1xf32>
    %cst_16 = arith.constant 1.000000e+00 : f32
    %23 = vector.broadcast %cst_16 : f32 to vector<1x8x1xf32>
    %24 = arith.addf %23, %22 : vector<1x8x1xf32>
    %25 = arith.divf %23, %24 : vector<1x8x1xf32>
    %26 = vector.extract_strided_slice %25 {offsets = [0, 0, 0], sizes = [1, 4, 1], strides = [1, 1, 1]} : vector<1x8x1xf32> to vector<1x4x1xf32>
    %27 = vector.extract_strided_slice %25 {offsets = [0, 4, 0], sizes = [1, 4, 1], strides = [1, 1, 1]} : vector<1x8x1xf32> to vector<1x4x1xf32>
    %c0_17 = arith.constant 0 : index
    %c0_18 = arith.constant 0 : index
    %c0_19 = arith.constant 0 : index
    %28 = vector.load %arg1[%c0_17, %c0_18, %c0_19] : memref<1x4x256xf32, #tpu.memory_space<vmem>>, vector<1x4x256xf32>
    %29 = vector.broadcast %26 : vector<1x4x1xf32> to vector<1x4x256xf32>
    %30 = arith.mulf %29, %28 : vector<1x4x256xf32>
    %c0_20 = arith.constant 0 : index
    %c0_21 = arith.constant 0 : index
    %c0_22 = arith.constant 0 : index
    %31 = vector.load %arg2[%c0_20, %c0_21, %c0_22] : memref<1x4x256xf32, #tpu.memory_space<vmem>>, vector<1x4x256xf32>
    %32 = vector.broadcast %27 : vector<1x4x1xf32> to vector<1x4x256xf32>
    %33 = arith.mulf %32, %31 : vector<1x4x256xf32>
    %34 = arith.addf %30, %33 : vector<1x4x256xf32>
    %c0_23 = arith.constant 0 : index
    %c0_24 = arith.constant 0 : index
    %c0_25 = arith.constant 0 : index
    %35 = vector.load %arg5[%c0_23, %c0_24, %c0_25] : memref<1x4x256xf32, #tpu.memory_space<vmem>>, vector<1x4x256xf32>
    tpu.vector_store %arg5[%c0_23, %c0_24, %c0_25], %34 {strides = array<i32>} : memref<1x4x256xf32, #tpu.memory_space<vmem>>, vector<1x4x256xf32>,
    return
  }
  func.func @transform_0(%arg0: i32) -> (i32, i32, i32) {
    %c0_i32 = arith.constant 0 : i32
    %c0_i32_0 = arith.constant 0 : i32
    %c0_i32_1 = arith.constant 0 : i32
    return %arg0, %c0_i32, %c0_i32_0 : i32, i32, i32
  }
  func.func @transform_1(%arg0: i32) -> (i32, i32, i32) {
    %c0_i32 = arith.constant 0 : i32
    %c0_i32_0 = arith.constant 0 : i32
    %c0_i32_1 = arith.constant 0 : i32
    return %arg0, %c0_i32, %c0_i32_0 : i32, i32, i32
  }
  func.func @transform_2(%arg0: i32) -> (i32, i32) {
    %c0_i32 = arith.constant 0 : i32
    %c0_i32_0 = arith.constant 0 : i32
    %c0_i32_1 = arith.constant 0 : i32
    return %c0_i32, %c0_i32_0 : i32, i32
  }
  func.func @transform_3(%arg0: i32) -> (i32, i32) {
    %c0_i32 = arith.constant 0 : i32
    %c0_i32_0 = arith.constant 0 : i32
    %c0_i32_1 = arith.constant 0 : i32
    return %c0_i32, %c0_i32_0 : i32, i32
  }
  func.func @transform_4(%arg0: i32) -> (i32, i32, i32) {
    %c0_i32 = arith.constant 0 : i32
    %c0_i32_0 = arith.constant 0 : i32
    %c0_i32_1 = arith.constant 0 : i32
    return %arg0, %c0_i32, %c0_i32_0 : i32, i32, i32
  }
}

</mosaic_0001>

<bundles_post_ra>
// kernel: tpu_custom_call.1
= control target key start
LH: loop header
LB: loop body
LE: loop exit
PB: predicated region body
PF: predicated region fallthrough
CT: control target
= control target key end

     0   :  { %9 = vsyncpa [#allocation3], 0  ;;  %s1067_s0 = inlined_call_operand.hbm [shape: f32[2,4,256], index: 0, kind: input, shape index: {}]   ;;  %s1068_s1 = inlined_call_operand.hbm [shape: f32[2,4,256], index: 1, kind: input, shape index: {}]   ;;  %s1069_s2 = inlined_call_operand.vmem [shape: f32[1,8], index: 2, kind: input, shape index: {}]   ;;  %s1070_s3 = inlined_call_operand.vmem [shape: f32[8,1], index: 3, kind: input, shape index: {}]   ;;  %s1071_s4 = inlined_call_operand.hbm [shape: f32[2,4,256], index: 4, kind: output, shape index: {}]  }
   0x1   :  { %11 = vsyncpa [#allocation3 + $0x1], 0 }
   0x2   :  { %12 = vsyncpa [#allocation6], 0 }
   0x3   :  { %14 = vsyncpa [#allocation6 + $0x1], 0 }
   0x4   :  { %15 = vsyncpa [#allocation4], 0 }
   0x5   :  { %17 = vsyncpa [#allocation4 + $0x1], 0  ;;  %s842_s15 = smov 0   ;;  %s844_s16 = smov 0  }
   0x6   :  { %s846_s17 = smov 0   ;;  %s848_s18 = smov 0  }
   0x7 LB: > { %s863_s19 = sadd.s32 4294967295, %s809_s18   ;;  %s577_s20 = sadd.s32 4294967294, %s809_s18   ;;  %s809_s18 = sphi %s848_s18, %s1090_s18   ;;  %s805_s17 = sphi %s846_s17, %s1089_s17   ;;  %s801_s16 = sphi %s844_s16, %s1088_s16   ;;  %s797_s15 = sphi %s842_s15, %s1087_s15  }
   0x8   : > { %s867_s21 = sadd.s32 1, %s809_s18   ;;  %s30_s22 = sadd.s32 1, %s805_s17 }
   0x9   : > { %s27_s23 = ssub.s32 %s809_s18, %s867_s21  ;;  %p37_p0 = scmp.ne.s32.totalorder %s805_s17, %s801_s16 }
   0xa   : > { %p28_p1 = scmp.eq.s32.totalorder %s27_s23, 0  ;;  %p38_p2 = scmp.eq.s32.totalorder %s809_s18, 0 }
   0xb   : > { %p43_p3 = scmp.ne.s32.totalorder %s801_s16, %s797_s15  ;;  %p44_p4 = scmp.eq.s32.totalorder %s863_s19, 0 }
   0xc   : > { %s879_s24 = scalar_select %p28_p1, %s805_s17, %s30_s22  }
   0xd   : > { %p881_p5 = por %p38_p2, %p37_p0  ;;  %p885_p6 = por %p44_p4, %p43_p3 }
   0xe   : > { %p135_p7 = scmp.eq.s32.totalorder %s863_s19, 1  ;;  %p141_p8 = scmp.eq.s32.totalorder %s577_s20, 1 }
   0xf   : > { %s1075_s26 = scalar_select %p885_p6, 1, 0 }
  0x10   : > { %p633_p10 = scmp.lt.s32.totalorder %s809_s18, 2  ;;  %p892_p11 = por %p135_p7, %p37_p0 }
  0x11   : > { %p896_p12 = por %p141_p8, %p43_p3  ;;  %s901_s29 = sand.u32 1, %s805_s17  }
  0x12   : > { %s1076_s27 = scalar_select %p892_p11, 1, 0 }
  0x13   : > { %s1077_s28 = scalar_select %p896_p12, 1, 0 }
  0x14   : > { %s599_s30 = sshll.u32 %s809_s18, 7  ;;  %s580_s5 = sshll.u32 %s901_s29, 3 }
  0x15   : > { %s910_s8 = scalar_lea.hbm %s1067_s0, %s599_s30  ;;  %s171_s9 = scalar_lea.vmem [#allocation2], %s580_s5 }
  0x16   : > { %s179_s10 = sshll.u32 %s171_s9, 4  ;;  %p916_p13 = pnand %p633_p10, %p881_p5  ;;  %s920_s10 = int_to_ptr.vmem [resolvable:$true] %s179_s10 }
  0x17   : > { %s168_s12 = scalar_lea.sflag [#allocation3], %s901_s29  ;;  %s679_s13 = scalar_lea.hbm %s910_s8, 128 }
  0x18   : > { %p680_p2 = scmp.ne.s32.totalorder %s910_s8, %s679_s13  ;;  %p681_p3 = pneg %p916_p13 }
  0x19   : > { %s684_s22 = scalar_lea.hbm %s1067_s0, 256  ;;  %p685_p5 = scmp.lt.u32.totalorder %s910_s8, %s1067_s0 }
  0x1a   : > { %p682_p4 = pnand %p681_p3, %p680_p2  ;;  %p686_p8 = scmp.lt.u32.totalorder %s684_s22, %s679_s13 }
  0x1b   : > { %p688_p9 = scmp.lt.u32.totalorder %s679_s13, %s910_s8 }
  0x1c   : > { %p683_p7 = pneg %p682_p4  ;;  %p687_p10 = por %p686_p8, %p685_p5 }
  0x1e   : > { %p689_p0 = por %p688_p9, %p687_p10 }
  0x20   : > { %p690_p1 = pnand %p689_p0, %p683_p7 }
  0x22   : > { %693 = shalt.err (!%p690_p1)
}
  0x23   : > { %s694_s6 = scalar_lea.vmem %s920_s10, 128  ;;  %s811_s7 = smov [#allocation2]  }
  0x24   : > { %p695_p2 = scmp.ne.s32.totalorder %s920_s10, %s694_s6  ;;  %s699_s9 = sshll.u32 %s811_s7, 4  ;;  %s700_s9 = int_to_ptr.vmem [resolvable:$false] %s699_s9 }
  0x25   : > { %s701_s14 = scalar_lea.vmem %s700_s9, 256  ;;  %p702_p11 = scmp.lt.s32.totalorder %s920_s10, %s700_s9 }
  0x26   : > { %p697_p4 = pnand %p695_p2, %p681_p3  ;;  %p703_p5 = scmp.lt.s32.totalorder %s701_s14, %s694_s6 }
  0x28   : > { %p698_p12 = pneg %p697_p4  ;;  %p704_p8 = por %p703_p5, %p702_p11 }
  0x2a   : > { %p705_p9 = pnand %p704_p8, %p698_p12 }
  0x2c   : > { %708 = shalt.err (!%p705_p9)
}
  0x2d   : > { %625 = dma.hbm_to_vmem [thread:$0]  (!%p916_p13), %s910_s8, 128, %s920_s10, %s168_s12  }
  0x2e   : > { %p1079_p0 = scmp.lt.s32.totalorder %s809_s18, 3  ;;  %p1080_p1 = scmp.ge.s32.totalorder %s809_s18, 1 }
  0x2f   : > { %s963_s23 = scalar_lea.hbm %s1068_s1, %s599_s30  ;;  %s190_s25 = scalar_lea.vmem [#allocation5], %s580_s5 }
  0x30   : > { %p954_p7 = pnand %p1080_p1, %p1079_p0  ;;  %s198_s6 = sshll.u32 %s190_s25, 4  ;;  %s199_s6 = int_to_ptr.vmem [resolvable:$true] %s198_s6 }
  0x31   : > { %s187_s8 = scalar_lea.sflag [#allocation6], %s901_s29  ;;  %s709_s10 = scalar_lea.hbm %s963_s23, 128 }
  0x32   : > { %s1081_s13 = scalar_select %p954_p7, 1, 0 }
  0x33   : > { %p710_p11 = scmp.ne.s32.totalorder %s963_s23, %s709_s10  ;;  %s714_s30 = scalar_lea.hbm %s1068_s1, 256 }
  0x34   : > { %p715_p2 = scmp.lt.u32.totalorder %s963_s23, %s1068_s1  ;;  %p716_p4 = scmp.lt.u32.totalorder %s714_s30, %s709_s10 }
  0x35   : > { %p712_p12 = pnand %p710_p11, %p681_p3  ;;  %p718_p8 = scmp.lt.u32.totalorder %s709_s10, %s963_s23 }
  0x36   : > { %p717_p5 = por %p716_p4, %p715_p2 }
  0x37   : > { %p713_p10 = pneg %p712_p12 }
  0x38   : > { %p719_p9 = por %p718_p8, %p717_p5 }
  0x3a   : > { %p720_p0 = pnand %p719_p9, %p713_p10 }
  0x3c   : > { %723 = shalt.err (!%p720_p0)
}
  0x3d   : > { %s724_s29 = scalar_lea.vmem %s199_s6, 128  ;;  %s812_s5 = smov [#allocation5]  }
  0x3e   : > { %p725_p1 = scmp.ne.s32.totalorder %s199_s6, %s724_s29  ;;  %s729_s20 = sshll.u32 %s812_s5, 4  ;;  %s730_s20 = int_to_ptr.vmem [resolvable:$false] %s729_s20 }
  0x3f   : > { %s731_s22 = scalar_lea.vmem %s730_s20, 256  ;;  %p732_p6 = scmp.lt.s32.totalorder %s199_s6, %s730_s20 }
  0x40   : > { %p727_p11 = pnand %p725_p1, %p681_p3  ;;  %p733_p7 = scmp.lt.s32.totalorder %s731_s22, %s724_s29 }
  0x42   : > { %p728_p12 = pneg %p727_p11  ;;  %p734_p2 = por %p733_p7, %p732_p6 }
  0x44   : > { %p735_p4 = pnand %p734_p2, %p728_p12 }
  0x46   : > { %738 = shalt.err (!%p735_p4)
}
  0x47   : > { %628 = dma.hbm_to_vmem [thread:$0]  (!%p916_p13), %s963_s23, 128, %s199_s6, %s187_s8  }
  0x48   : > { %p1082_p10 = scmp.ne.s32.totalorder %s1081_s13, 0 }
  0x49   : > { %s990_s25 = sand.u32 (!%p1082_p10), 1, %s801_s16   ;;  %p1083_p6 = scmp.ne.s32.totalorder (!%p1082_p10), %s1075_s26, 0 }
  0x4a   : > { %207 = sbr.rel (%p1082_p10) target bundleno = 843 (0x34b), region = 36  ;;  %s993_s10 = sshll.u32 (!%p1082_p10), %s990_s25, 3 }
  0x4b   : > { %s210_s12 = scalar_lea.sflag (!%p1082_p10), [#allocation3], %s990_s25  ;;  %s213_s7 = scalar_lea.vmem (!%p1082_p10), [#allocation2], %s993_s10 }
  0x51   : > { %784 = dma.done.wait (%p1083_p6), %s210_s12, 128  }
  0x52   : > { %786 = vsyncadd (%p1083_p6), %s210_s12, 4294967168  ;;  %s219_s11 = scalar_lea.sflag [#allocation6], %s990_s25  ;;  %s222_s13 = scalar_lea.vmem [#allocation5], %s993_s10 }
  0x53   : > { %788 = dma.done.wait (%p1083_p6), %s219_s11, 128  }
  0x54   : > { %790 = vsyncadd (%p1083_p6), %s219_s11, 4294967168  ;;  %vm256_vm0 = vcmask 1043456   ;;  %v263_v0 = vld [vmem:[%s222_s13] sm:$0xff]  ;;  %v252_v1 = vld [vmem:[%s213_s7] sm:$0xff]  ;;  %v813_v10 = vmov 0.0   ;;  %vm814_vm1 = vmmov 0  }
  0x55   : > { %v265_v2 = vcombine.high %v263_v0, %v263_v0  ;;  %v267_v3 = vsel %vm256_vm0, %v263_v0, 0.0  ;;  %v254_v4 = vcombine.high %v252_v1, %v252_v1  ;;  %v257_v6 = vsel %vm256_vm0, %v252_v1, 0.0  ;;  %606 = vmatprep.subr.mxu0 %v813_v10  ;;  %611 = vmatprep.subr.mxu1 %v813_v10  ;;  %v278_v16 = vld [vmem:[%s1069_s2] sm:$0x1]  ;;  %s601_s30 = sshll.u32 %s863_s19, 7  ;;  %s251_s9 = scalar_lea.vmem [#allocation7], %s993_s10 }
  0x56   : > { %608 = vmatprep.mubr.msk.f32.mxu0 %vm814_vm1, %v813_v10  ;;  %613 = vmatprep.mubr.msk.f32.mxu1 %vm814_vm1, %v813_v10  ;;  %vm279_vm2 = vcmask 64512   ;;  %vm359_vm3 = vcmask 1040384   ;;  %v354_v20 = vld [vmem:[%s1070_s3] sm:$0xff]  ;;  %vm355_vm4 = vcmask 7168   ;;  %v815_v21 = vmov 0   ;;  %s484_s14 = sshll.u32 %s251_s9, 4  ;;  %s1023_s20 = scalar_lea.hbm %s1071_s4, %s601_s30  ;;  %s1025_s14 = int_to_ptr.vmem [resolvable:$true] %s484_s14 }
  0x57   : > { %v268_v5 = vsel %vm256_vm0, %v265_v2, 0.0  ;;  %v258_v7 = vsel %vm256_vm0, %v254_v4, 0.0  ;;  %670 = vset.pattern.permute.xlu1 %v815_v21  ;;  %671 = vset.pattern.permute.xlu0 %v815_v21  ;;  %v452_v28 = vcombine.low %v263_v0, %v263_v0  ;;  %s470_s22 = scalar_lea.sflag [#allocation4], %s990_s25  ;;  %s739_s12 = scalar_lea.vmem %s1025_s14, 128 }
  0x58   : > { %v269_v8 = vadd.f32 %v268_v5, %v267_v3  ;;  %v259_v9 = vadd.f32 %v258_v7, %v257_v6  ;;  %p740_p13 = scmp.ne.s32.totalorder %s1025_s14, %s739_s12  ;;  %p1084_p3 = scmp.ne.s32.totalorder %s1076_s27, 0 }
  0x59   : > { %s816_s19 = smov [#allocation7]  }
  0x5a   : > { %270 = vadd.xlane.f32.xlu0 %v269_v8  ;;  %p741_p7 = pnand %p740_p13, %p1084_p3  ;;  %s743_s10 = sshll.u32 %s816_s19, 4  ;;  %s744_s10 = int_to_ptr.vmem [resolvable:$false] %s743_s10 }
  0x5b   : > { %s745_s7 = scalar_lea.vmem %s744_s10, 256  ;;  %p746_p8 = scmp.lt.s32.totalorder %s1025_s14, %s744_s10 }
  0x5c   : > { %p742_p5 = pneg %p741_p7  ;;  %p747_p9 = scmp.lt.s32.totalorder %s745_s7, %s739_s12 }
  0x5e   : > { %260 = vadd.xlane.f32.xlu0 %v259_v9  ;;  %p748_p0 = por %p747_p9, %p746_p8 }
  0x60   : > { %p749_p1 = pnand %p748_p0, %p742_p5 }
  0xe7   : > { %v271_v11 = vpop.xlane.xlu0 %270 }
  0xe8   : > { %v274_v12 = vrot.slane %v271_v11, 4 }
  0xeb   : > { %v261_v13 = vpop.xlane.xlu0 %260 }
  0xec   : > { %v276_v14 = vsel %vm256_vm0, %v261_v13, %v274_v12 }
  0xed   : > { %v277_v15 = vmul.f32 0.00390625, %v276_v14 }
  0xef   : > { %607 = vmatpush3.msra.mxu0 %v277_v15 }
  0xf0   : > { %609 = vmatmul.mubr.msk.f32.vlgmr.msra.gmra.mrb[0].mxu0 %vm279_vm2, %v278_v16 }
 0x1c3   : > { %v349_v17 = vpop.f32.mrb[0].mxu0 }
 0x1c4   : > { %v353_v18 = vmax.f32 %v349_v17, 0.0  ;;  %v610_v19 = vpop.f32.mrb[1].mxu0 }
 0x1c6   : > { %612 = vmatpush3.msk.msra.mxu1 %vm359_vm3, %v353_v18 }
 0x1c7   : > { %614 = vmatmul.mubr.msk.f32.vlgmr.msra.gmra.mrb[0].mxu1 %vm355_vm4, %v354_v20 }
 0x29a   : > { %v429_v22 = vpop.f32.mrb[0].mxu1 }
 0x29b   : > { %v593_v23 = vmul.f32 -1.442695, %v429_v22  ;;  %v615_v24 = vpop.f32.mrb[1].mxu1 }
 0x29d   : > { %675 = vpow2.f32 %v593_v23 }
 0x2a7   : > { %v676_v25 = vpop.eup %675 }
 0x2a8   : > { %v436_v26 = vadd.f32 1.0, %v676_v25 }
 0x2aa   : > { %677 = vrcp.f32 %v436_v26 }
 0x2b4   : > { %v678_v27 = vpop.eup %677 }
 0x2b5   : > { %442 = vperm.xlu1 %670, %v678_v27  }
 0x334   : > { %v443_v29 = vpop.permute.xlu1 %442 }
 0x335   : > { %v454_v30 = vmul.f32 %v452_v28, %v443_v29  ;;  %v455_v31 = vmul.f32 %v443_v29, %v263_v0  ;;  %v448_v32 = vmul.f32 %v443_v29, %v252_v1  ;;  %v449_v33 = vmul.f32 %v443_v29, %v254_v4 }
 0x337   : > { %v458_v34 = vrot.slane %v454_v30, 4  ;;  %v459_v35 = vrot.slane %v455_v31, 4 }
 0x339   : > { %v462_v36 = vadd.f32 %v458_v34, %v448_v32  ;;  %v463_v37 = vadd.f32 %v459_v35, %v449_v33 }
 0x33b   : > { %v466_v38 = vcombine.low %v462_v36, %v463_v37 }
 0x33d   : > { %468 = vst [vmem:[%s251_s9] sm:$0xff] %v466_v38 }
 0x33e   : > { %752 = shalt.err (!%p749_p1)
}
 0x33f   : > { %s753_s25 = scalar_lea.hbm %s1023_s20, 128  ;;  %s757_s26 = scalar_lea.hbm %s1071_s4, 256 }
 0x340   : > { %p754_p11 = scmp.ne.s32.totalorder %s1023_s20, %s753_s25  ;;  %p758_p4 = scmp.lt.u32.totalorder %s1023_s20, %s1071_s4 }
 0x341   : > { %p759_p10 = scmp.lt.u32.totalorder %s757_s26, %s753_s25  ;;  %p761_p13 = scmp.lt.u32.totalorder %s753_s25, %s1023_s20 }
 0x342   : > { %p755_p12 = pnand %p754_p11, %p1084_p3 }
 0x343   : > { %p760_p6 = por %p759_p10, %p758_p4 }
 0x344   : > { %p756_p2 = pneg %p755_p12 }
 0x345   : > { %p762_p7 = por %p761_p13, %p760_p6 }
 0x347   : > { %p763_p5 = pnand %p762_p7, %p756_p2 }
 0x349   : > { %766 = shalt.err (!%p763_p5)
}
 0x34a   : > { %620 = dma.vmem_to_hbm [thread:$0]  (%p1084_p3), %s1025_s14, 128, %s1023_s20, %s470_s22  }
 0x34b PF: > { %s496_s8 = sand.u32 1, %s797_s15   ;;  %p1085_p8 = scmp.ne.s32.totalorder %s1077_s28, 0 }
 0x34c   : > { %p1086_p9 = scmp.ge.s32.totalorder %s809_s18, 2  ;;  %s497_s30 = scalar_lea.sflag [#allocation4], %s496_s8 }
 0x34e   : > { %p630_p0 = pnand %p1086_p9, %p1085_p8 }
 0x350   : > { %792 = dma.done.wait (!%p630_p0), %s497_s30, 128  }
 0x351   : > { %794 = vsyncadd (!%p630_p0), %s497_s30, 4294967168  ;;  %p20_p1 = scmp.ge.s32.totalorder %s867_s21, 4   ;;  %s1087_s15 = smov %s801_s16 }
 0x352   : > { %s1088_s16 = smov %s805_s17  ;;  %s1089_s17 = smov %s879_s24 }
 0x353   : > { %s1090_s18 = smov %s867_s21  ;;  %22 = sbr.rel (!%p20_p1) target bundleno = 7 (0x7), region = 94 }
 0x35a   :  { %502 = vsyncpa [#allocation3], 1 }
 0x35b   :  { %504 = vsyncpa [#allocation3 + $0x1], 1 }
 0x35c   :  { %505 = vsyncpa [#allocation6], 1 }
 0x35d   :  { %507 = vsyncpa [#allocation6 + $0x1], 1 }
 0x35e   :  { %508 = vsyncpa [#allocation4], 1 }
 0x35f   :  { %510 = vsyncpa [#allocation4 + $0x1], 1 }

</bundles_post_ra>
